<compile_context>
chip_gen: v5e
topology: v5e:2x2
jax: 0.10.0
libtpu: 0.0.40
codegen_flags: <defaults>
</compile_context>

<pallas_src>
import functools

import jax
import jax.numpy as jnp
from jax.experimental import pallas as pl
from jax.experimental.pallas import tpu as pltpu


def _round_up(x, m):
    return ((x + m - 1) // m) * m


# --------------------------------------------------------------------------
# Kernels
# --------------------------------------------------------------------------

def _reluff_resident_kernel(x_ref, wi_ref, wo_ref, o_ref):
    # x_ref : (tm, dm_p)     row tile
    # wi_ref: (dm_p, df_p)   full Wi, VMEM-resident (same block every step)
    # wo_ref: (df_p, dm_p)   full Wo, VMEM-resident
    # o_ref : (tm, dm_p)     output row tile
    h = jnp.dot(x_ref[...], wi_ref[...], preferred_element_type=jnp.float32)
    h = jnp.maximum(h, 0.0).astype(wo_ref.dtype)
    # Dropout: identity in eval mode.
    o_ref[...] = jnp.dot(
        h, wo_ref[...], preferred_element_type=jnp.float32).astype(o_ref.dtype)


def _reluff_streamed_kernel(x_ref, wi_ref, wo_ref, o_ref, acc_ref):
    # Fallback for weights that do not fit VMEM.
    # x_ref : (tm, dm_p)     row tile, constant across k
    # wi_ref: (dm_p, tk)     k-th column slab of Wi
    # wo_ref: (tk, dm_p)     k-th row slab of Wo
    # o_ref : (tm, dm_p)     output row tile (same block across k)
    # acc_ref: (tm, dm_p) f32 VMEM accumulator
    k = pl.program_id(1)

    @pl.when(k == 0)
    def _():
        acc_ref[...] = jnp.zeros_like(acc_ref)

    h = jnp.dot(x_ref[...], wi_ref[...], preferred_element_type=jnp.float32)
    h = jnp.maximum(h, 0.0).astype(wo_ref.dtype)
    # Dropout: identity in eval mode.
    acc_ref[...] += jnp.dot(h, wo_ref[...], preferred_element_type=jnp.float32)

    @pl.when(k == pl.num_programs(1) - 1)
    def _():
        o_ref[...] = acc_ref[...].astype(o_ref.dtype)


# --------------------------------------------------------------------------
# Wrapper
# --------------------------------------------------------------------------

def prepare_reluff_weights(wi, wo):
    """Pad math-layout weights once, OUTSIDE the per-call forward path.

    wi: (d_model, d_ff), wo: (d_ff, d_model)  ->  padded to multiples of 128.
    Zero padding is exact through relu + matmul.
    """
    d_model, d_ff = wi.shape
    assert wo.shape == (d_ff, d_model)
    dm_p = _round_up(d_model, 128)
    df_p = _round_up(d_ff, 128)
    if (dm_p, df_p) != (d_model, d_ff):
        wi = jnp.pad(wi, ((0, dm_p - d_model), (0, df_p - d_ff)))
        wo = jnp.pad(wo, ((0, df_p - d_ff), (0, dm_p - d_model)))
    return wi, wo


def _pick_tk(df_p, target):
    """Largest multiple of 128 that is <= target and divides df_p (df_p % 128 == 0)."""
    tk = max(128, min((target // 128) * 128, df_p))
    while df_p % tk != 0:
        tk -= 128
    return tk


@functools.partial(
    jax.jit, static_argnames=("tm", "tk", "max_resident_weight_bytes"))
def reluff_forward(x, wi_p, wo_p, *, tm=None, tk=None,
                   max_resident_weight_bytes=16 * 1024 * 1024):
    """x: (B, S, d_model); wi_p: (dm_p, df_p); wo_p: (df_p, dm_p) -> (B, S, d_model).

    wi_p / wo_p are the math-layout weights already padded by
    prepare_reluff_weights (do that ONCE at weight-load time, not per call).
    """
    B, S, d_model = x.shape
    dm_p, df_p = wi_p.shape
    assert wo_p.shape == (df_p, dm_p)
    assert dm_p >= d_model and dm_p % 128 == 0 and df_p % 128 == 0
    assert x.dtype == wi_p.dtype == wo_p.dtype, "mixed-dtype inputs not supported"

    M = B * S
    itemsize = jnp.dtype(x.dtype).itemsize
    is_bf16 = x.dtype == jnp.bfloat16

    # Row tile: big enough to amortise weight DMA / per-step overhead, clamped
    # to the actual row count (small-batch inference), and capped so there are
    # at least two M tiles when M is large (v7x has 2 TensorCores and the
    # "parallel" M axis is what gets sharded across them).
    if tm is None:
        tm = 512 if is_bf16 else 256
    tm = min(tm, _round_up(M, 8))
    if M >= 256:
        tm = min(tm, _round_up((M + 1) // 2, 8))
    m_p = _round_up(M, tm)

    # Pad x only when actually needed (zero padding is exact).
    x2 = x.reshape(M, d_model)
    if (m_p, dm_p) != (M, d_model):
        x2 = jnp.pad(x2, ((0, m_p - M), (0, dm_p - d_model)))

    weight_bytes = (wi_p.size + wo_p.size) * itemsize
    resident = weight_bytes <= max_resident_weight_bytes
    flops = 4 * m_p * dm_p * df_p  # two matmuls

    if resident:
        # ---------------- resident-weight path: grid = (M_tiles,) ----------
        grid = (m_p // tm,)
        cost = pl.CostEstimate(
            flops=flops, transcendentals=0,
            bytes_accessed=(2 * m_p * dm_p + wi_p.size + wo_p.size) * itemsize)
        vmem_need = (
            4 * tm * dm_p * itemsize          # x + out tiles, double-buffered
            + 2 * weight_bytes                # weights (conservative 2x budget)
            + tm * df_p * (4 + itemsize))     # f32 h + narrowed copy
        vmem_limit = int(min(max(vmem_need + (8 << 20), 16 << 20), 48 << 20))

        out2 = pl.pallas_call(
            _reluff_resident_kernel,
            out_shape=jax.ShapeDtypeStruct((m_p, dm_p), x.dtype),
            grid_spec=pltpu.PrefetchScalarGridSpec(
                num_scalar_prefetch=0,
                grid=grid,
                in_specs=[
                    pl.BlockSpec((tm, dm_p), lambda i: (i, 0)),    # x row tile
                    pl.BlockSpec((dm_p, df_p), lambda i: (0, 0)),  # Wi resident
                    pl.BlockSpec((df_p, dm_p), lambda i: (0, 0)),  # Wo resident
                ],
                out_specs=pl.BlockSpec((tm, dm_p), lambda i: (i, 0)),
            ),
            compiler_params=pltpu.CompilerParams(
                dimension_semantics=("parallel",),
                vmem_limit_bytes=vmem_limit,
            ),
            cost_estimate=cost,
        )(x2, wi_p, wo_p)
    else:
        # ---------------- streamed fallback: grid = (M_tiles, k_tiles) -----
        if tk is None:
            tk = 512 if is_bf16 else 256
        tk = _pick_tk(df_p, tk)
        grid = (m_p // tm, df_p // tk)

        cost = pl.CostEstimate(
            flops=flops, transcendentals=0,
            bytes_accessed=(2 * m_p * dm_p
                            + grid[0] * (wi_p.size + wo_p.size)) * itemsize)
        vmem_need = (
            4 * tm * dm_p * itemsize           # x + out tiles, double-buffered
            + 6 * dm_p * tk * itemsize         # Wi + Wo slabs, up to 3 buffers
            + tm * dm_p * 4                    # f32 accumulator scratch
            + tm * tk * (4 + itemsize))        # f32 h + narrowed copy
        vmem_limit = int(min(max(vmem_need + (8 << 20), 16 << 20), 48 << 20))

        if grid[1] >= 3:
            wi_spec = pl.BlockSpec((dm_p, tk), lambda i, k: (0, k),
                                   pipeline_mode=pl.Buffered(3))
            wo_spec = pl.BlockSpec((tk, dm_p), lambda i, k: (k, 0),
                                   pipeline_mode=pl.Buffered(3))
        else:
            wi_spec = pl.BlockSpec((dm_p, tk), lambda i, k: (0, k))
            wo_spec = pl.BlockSpec((tk, dm_p), lambda i, k: (k, 0))

        out2 = pl.pallas_call(
            _reluff_streamed_kernel,
            out_shape=jax.ShapeDtypeStruct((m_p, dm_p), x.dtype),
            grid_spec=pltpu.PrefetchScalarGridSpec(
                num_scalar_prefetch=0,
                grid=grid,
                in_specs=[
                    pl.BlockSpec((tm, dm_p), lambda i, k: (i, 0)),  # x row tile
                    wi_spec,                                        # Wi k-slab
                    wo_spec,                                        # Wo k-slab
                ],
                out_specs=pl.BlockSpec((tm, dm_p), lambda i, k: (i, 0)),
                scratch_shapes=[pltpu.VMEM((tm, dm_p), jnp.float32)],
            ),
            compiler_params=pltpu.CompilerParams(
                dimension_semantics=("parallel", "arbitrary"),
                vmem_limit_bytes=vmem_limit,
            ),
            cost_estimate=cost,
        )(x2, wi_p, wo_p)

    return out2[:M, :d_model].reshape(B, S, d_model)


def reluff_reference(x, wi, wo):
    h = jnp.maximum(jnp.einsum("bsd,df->bsf", x, wi), 0.0)
    return jnp.einsum("bsf,fd->bsd", h, wo)


# --------------------------------------------------------------------------
# Demo / self-test
# --------------------------------------------------------------------------

if __name__ == "__main__":
    key = jax.random.PRNGKey(0)
    kx, kwi, kwo, kx2, kwi2, kwo2 = jax.random.split(key, 6)

    # --- small aligned shapes (d_model : d_ff = 1 : 4) ----------------------
    B, S, d_model, d_ff = 2, 8, 128, 512
    x = jax.random.normal(kx, (B, S, d_model), dtype=jnp.float32)
    # PyTorch Linear stores weight as (out_features, in_features); transpose
    # ONCE to the math layout and pad ONCE, outside the jitted forward path.
    wi_torch = jax.random.normal(kwi, (d_ff, d_model), dtype=jnp.float32) * 0.05
    wo_torch = jax.random.normal(kwo, (d_model, d_ff), dtype=jnp.float32) * 0.05
    wi = jnp.asarray(wi_torch.T)   # (d_model, d_ff)
    wo = jnp.asarray(wo_torch.T)   # (d_ff, d_model)
    wi_p, wo_p = prepare_reluff_weights(wi, wo)

    ref = reluff_reference(x, wi, wo)

    # f32, resident-weight path.
    out = reluff_forward(x, wi_p, wo_p)
    jax.block_until_ready(out)
    assert out.shape == (B, S, d_model)
    assert jnp.allclose(out, ref, atol=1e-3, rtol=1e-3)

    # bf16, resident-weight path (loose check vs f32 reference).
    wi_bp, wo_bp = prepare_reluff_weights(wi.astype(jnp.bfloat16),
                                          wo.astype(jnp.bfloat16))
    out_bf = reluff_forward(x.astype(jnp.bfloat16), wi_bp, wo_bp)
    jax.block_until_ready(out_bf)
    assert out_bf.shape == (B, S, d_model)
    assert jnp.allclose(out_bf.astype(jnp.float32), ref, atol=1e-1, rtol=1e-1)

    # f32, streamed fallback path (forced) — exercises the large-weight code path.
    out_s = reluff_forward(x, wi_p, wo_p, max_resident_weight_bytes=0)
    jax.block_until_ready(out_s)
    assert jnp.allclose(out_s, ref, atol=1e-3, rtol=1e-3)

    # --- ragged real-module dims (d_model=300, d_ff=1200), small M ----------
    d_model_r, d_ff_r = 300, 1200
    x_r = jax.random.normal(kx2, (B, S, d_model_r), dtype=jnp.float32)
    wi_r = jax.random.normal(kwi2, (d_model_r, d_ff_r), dtype=jnp.float32) * 0.05
    wo_r = jax.random.normal(kwo2, (d_ff_r, d_model_r), dtype=jnp.float32) * 0.05
    wi_rp, wo_rp = prepare_reluff_weights(wi_r, wo_r)

    out_r = reluff_forward(x_r, wi_rp, wo_rp)
    jax.block_until_ready(out_r)
    ref_r = reluff_reference(x_r, wi_r, wo_r)
    assert out_r.shape == (B, S, d_model_r)
    assert jnp.allclose(out_r, ref_r, atol=1e-3, rtol=1e-3)

    print("KERNEL_OK")
</pallas_src>

<mosaic_0001>
module attributes {stable_mosaic.version = 11 : i64} {
  func.func @_reluff_resident_kernel(%arg0: i32, %arg1: memref<16x128xf32, #tpu.memory_space<vmem>>, %arg2: memref<128x512xf32, #tpu.memory_space<vmem>>, %arg3: memref<512x128xf32, #tpu.memory_space<vmem>>, %arg4: memref<16x128xf32, #tpu.memory_space<vmem>>) attributes {dimension_semantics = [#tpu.dimension_semantics<parallel>], iteration_bounds = array<i64: 1>, scalar_prefetch = 0 : i64, scratch_operands = 0 : i64, tpu.core_type = #tpu.core_type<tc>, window_params = [{transform_indices = @transform_0, window_bounds = array<i64: 16, 128>}, {pipeline_mode = #tpu.pipeline_mode<synchronous>, transform_indices = @transform_1, window_bounds = array<i64: 128, 512>}, {pipeline_mode = #tpu.pipeline_mode<synchronous>, transform_indices = @transform_2, window_bounds = array<i64: 512, 128>}, {transform_indices = @transform_3, window_bounds = array<i64: 16, 128>}]} {
    %c0 = arith.constant 0 : index
    %c0_0 = arith.constant 0 : index
    %0 = vector.load %arg1[%c0, %c0_0] : memref<16x128xf32, #tpu.memory_space<vmem>>, vector<16x128xf32>
    %c0_1 = arith.constant 0 : index
    %c0_2 = arith.constant 0 : index
    %1 = vector.load %arg2[%c0_1, %c0_2] : memref<128x512xf32, #tpu.memory_space<vmem>>, vector<128x512xf32>
    %cst = arith.constant dense<0.000000e+00> : vector<16x512xf32>
    %2 = tpu.matmul %0, %1, %cst {dimension_numbers = #tpu.dot_dimension_numbers<[1], [0], [0], [1], [0, 0, 1, 1], [], []>} : vector<16x128xf32>, vector<128x512xf32>, vector<16x512xf32> -> vector<16x512xf32>
    %cst_3 = arith.constant 0.000000e+00 : f32
    %3 = vector.broadcast %cst_3 : f32 to vector<16x512xf32>
    %4 = arith.maximumf %2, %3 : vector<16x512xf32>
    %c0_4 = arith.constant 0 : index
    %c0_5 = arith.constant 0 : index
    %5 = vector.load %arg3[%c0_4, %c0_5] : memref<512x128xf32, #tpu.memory_space<vmem>>, vector<512x128xf32>
    %cst_6 = arith.constant dense<0.000000e+00> : vector<16x128xf32>
    %6 = tpu.matmul %4, %5, %cst_6 {dimension_numbers = #tpu.dot_dimension_numbers<[1], [0], [0], [1], [0, 0, 1, 1], [], []>} : vector<16x512xf32>, vector<512x128xf32>, vector<16x128xf32> -> vector<16x128xf32>
    %c0_7 = arith.constant 0 : index
    %c0_8 = arith.constant 0 : index
    %7 = vector.load %arg4[%c0_7, %c0_8] : memref<16x128xf32, #tpu.memory_space<vmem>>, vector<16x128xf32>
    tpu.vector_store %arg4[%c0_7, %c0_8], %6 {strides = array<i32>} : memref<16x128xf32, #tpu.memory_space<vmem>>, vector<16x128xf32>,
    return
  }
  func.func @transform_0(%arg0: i32) -> (i32, i32) {
    %c0_i32 = arith.constant 0 : i32
    %c0_i32_0 = arith.constant 0 : i32
    return %arg0, %c0_i32 : i32, i32
  }
  func.func @transform_1(%arg0: i32) -> (i32, i32) {
    %c0_i32 = arith.constant 0 : i32
    %c0_i32_0 = arith.constant 0 : i32
    %c0_i32_1 = arith.constant 0 : i32
    return %c0_i32, %c0_i32_0 : i32, i32
  }
  func.func @transform_2(%arg0: i32) -> (i32, i32) {
    %c0_i32 = arith.constant 0 : i32
    %c0_i32_0 = arith.constant 0 : i32
    %c0_i32_1 = arith.constant 0 : i32
    return %c0_i32, %c0_i32_0 : i32, i32
  }
  func.func @transform_3(%arg0: i32) -> (i32, i32) {
    %c0_i32 = arith.constant 0 : i32
    %c0_i32_0 = arith.constant 0 : i32
    return %arg0, %c0_i32 : i32, i32
  }
}

</mosaic_0001>

<bundles_post_ra>
// kernel: reluff_forward.1
= control target key start
LH: loop header
LB: loop body
LE: loop exit
PB: predicated region body
PF: predicated region fallthrough
CT: control target
= control target key end

     0   :  { %8 = vsyncpa [#allocation3], 0  ;;  %s565_s0 = inlined_call_operand.hbm [shape: f32[16,128], index: 0, kind: input, shape index: {}]   ;;  %s566_s1 = inlined_call_operand.hbm [shape: f32[128,512], index: 1, kind: input, shape index: {}]   ;;  %s567_s2 = inlined_call_operand.hbm [shape: f32[512,128], index: 2, kind: input, shape index: {}]   ;;  %s568_s3 = inlined_call_operand.hbm [shape: f32[16,128], index: 3, kind: output, shape index: {}]  }
   0x1   :  { %9 = vsyncpa [#allocation6], 0  ;;  %s28_s14 = sshll.u32 %s566_s1, 4  ;;  %s29_s14 = int_to_ptr.hbm [resolvable:$true] %s28_s14 }
   0x2   :  { %10 = vsyncpa [#allocation4], 0  ;;  %s516_s15 = smov [#allocation5]   ;;  %s15_s19 = sshll.u32 %s565_s0, 4  ;;  %s16_s19 = int_to_ptr.hbm [resolvable:$true] %s15_s19 }
   0x3   :  { %s30_s16 = sshll.u32 %s516_s15, 4  ;;  %s517_s20 = smov 512   ;;  %s31_s16 = int_to_ptr.vmem [resolvable:$true] %s30_s16 }
   0x4   :  { %s518_s21 = smov 32   ;;  %s519_s22 = smov [#allocation2]  }
   0x5   :  { %36 = dma.hbm_to_vmem [thread:$0]  %s29_s14, 8192, %s31_s16, [#allocation6], %s517_s20, %s517_s20, %s518_s21  }
   0x6   :  { %s17_s23 = sshll.u32 %s519_s22, 4  ;;  %s520_s24 = smov 128   ;;  %s18_s23 = int_to_ptr.vmem [resolvable:$true] %s17_s23 }
   0x7   :  { %s521_s25 = smov 8   ;;  %s41_s27 = sshll.u32 %s567_s2, 4  ;;  %s42_s27 = int_to_ptr.hbm [resolvable:$true] %s41_s27 }
   0x8   :  { %23 = dma.hbm_to_vmem [thread:$0]  %s16_s19, 256, %s18_s23, [#allocation3], %s520_s24, %s520_s24, %s521_s25  }
   0x9   :  { %s522_s28 = smov [#allocation7]  }
   0xa   :  { %s43_s0 = sshll.u32 %s522_s28, 4  ;;  %s44_s0 = int_to_ptr.vmem [resolvable:$true] %s43_s0 }
   0xb   :  { %49 = dma.hbm_to_vmem [thread:$0]  %s42_s27, 8192, %s44_s0, [#allocation6], %s520_s24, %s520_s24, %s521_s25  }
   0xc   :  { %510 = dma.done.wait [#allocation3], 256  }
   0xd   :  { %511 = vsyncadd [#allocation3], 4294967040 }
   0xe   :  { %512 = dma.done.wait [#allocation6], 16384  }
   0xf   :  { %513 = vsyncadd [#allocation6], 4294950912  ;;  %v126_v0 = vld [vmem:[#allocation5 + $0x1f0] sm:$0xff]  ;;  %v127_v2 = vld [vmem:[#allocation5 + $0x1f8] sm:$0xff]  ;;  %s523_s2 = smov [#allocation8]   ;;  %s392_s5 = sshll.u32 %s568_s3, 4  ;;  %s393_s5 = int_to_ptr.hbm [resolvable:$true] %s392_s5 }
  0x10   :  { %v122_v1 = vld [vmem:[#allocation5 + $0x1d0] sm:$0xff]  ;;  %174 = vmatpush.msra.mxu2 %v126_v0  ;;  %197 = vmatpush.msra.mxu3 %v127_v2  ;;  %v123_v3 = vld [vmem:[#allocation5 + $0x1d8] sm:$0xff]  ;;  %v124_v7 = vld [vmem:[#allocation5 + $0x1e0] sm:$0xff]  ;;  %s390_s29 = sshll.u32 %s523_s2, 4  ;;  %s391_s29 = int_to_ptr.vmem [resolvable:$true] %s390_s29 }
  0x11   :  { %v118_v4 = vld [vmem:[#allocation5 + $0x1b0] sm:$0xff]  ;;  %v119_v5 = vld [vmem:[#allocation5 + $0x1b8] sm:$0xff]  ;;  %v125_v8 = vld [vmem:[#allocation5 + $0x1e8] sm:$0xff]  ;;  %128 = vmatpush.msra.mxu0 %v124_v7 }
  0x12   :  { %175 = vmatpush.msra.mxu2 %v122_v1  ;;  %198 = vmatpush.msra.mxu3 %v123_v3  ;;  %v114_v6 = vld [vmem:[#allocation5 + $0x190] sm:$0xff]  ;;  %v115_v9 = vld [vmem:[#allocation5 + $0x198] sm:$0xff]  ;;  %v120_v10 = vld [vmem:[#allocation5 + $0x1c0] sm:$0xff] }
  0x13   :  { %151 = vmatpush.msra.mxu1 %v125_v8  ;;  %v121_v11 = vld [vmem:[#allocation5 + $0x1c8] sm:$0xff]  ;;  %v116_v12 = vld [vmem:[#allocation5 + $0x1a0] sm:$0xff]  ;;  %v110_v13 = vld [vmem:[#allocation5 + $0x170] sm:$0xff]  ;;  %129 = vmatpush.msra.mxu0 %v120_v10 }
  0x14   :  { %176 = vmatpush.msra.mxu2 %v118_v4  ;;  %199 = vmatpush.msra.mxu3 %v119_v5  ;;  %v111_v14 = vld [vmem:[#allocation5 + $0x178] sm:$0xff]  ;;  %v117_v15 = vld [vmem:[#allocation5 + $0x1a8] sm:$0xff]  ;;  %v112_v16 = vld [vmem:[#allocation5 + $0x180] sm:$0xff] }
  0x15   :  { %152 = vmatpush.msra.mxu1 %v121_v11  ;;  %v113_v17 = vld [vmem:[#allocation5 + $0x188] sm:$0xff]  ;;  %v106_v18 = vld [vmem:[#allocation5 + $0x150] sm:$0xff]  ;;  %v107_v19 = vld [vmem:[#allocation5 + $0x158] sm:$0xff]  ;;  %130 = vmatpush.msra.mxu0 %v116_v12 }
  0x16   :  { %177 = vmatpush.msra.mxu2 %v114_v6  ;;  %200 = vmatpush.msra.mxu3 %v115_v9  ;;  %v108_v20 = vld [vmem:[#allocation5 + $0x160] sm:$0xff]  ;;  %v109_v21 = vld [vmem:[#allocation5 + $0x168] sm:$0xff]  ;;  %v102_v22 = vld [vmem:[#allocation5 + $0x130] sm:$0xff] }
  0x17   :  { %153 = vmatpush.msra.mxu1 %v117_v15  ;;  %v103_v23 = vld [vmem:[#allocation5 + $0x138] sm:$0xff]  ;;  %131 = vmatpush.msra.mxu0 %v112_v16  ;;  %v104_v24 = vld [vmem:[#allocation5 + $0x140] sm:$0xff]  ;;  %v105_v25 = vld [vmem:[#allocation5 + $0x148] sm:$0xff] }
  0x18   :  { %178 = vmatpush.msra.mxu2 %v110_v13  ;;  %201 = vmatpush.msra.mxu3 %v111_v14  ;;  %v98_v26 = vld [vmem:[#allocation5 + $0x110] sm:$0xff]  ;;  %v99_v27 = vld [vmem:[#allocation5 + $0x118] sm:$0xff]  ;;  %v100_v28 = vld [vmem:[#allocation5 + $0x120] sm:$0xff] }
  0x19   :  { %154 = vmatpush.msra.mxu1 %v113_v17  ;;  %132 = vmatpush.msra.mxu0 %v108_v20  ;;  %v101_v29 = vld [vmem:[#allocation5 + $0x128] sm:$0xff]  ;;  %v94_v30 = vld [vmem:[#allocation5 + $0xf0] sm:$0xff]  ;;  %v95_v31 = vld [vmem:[#allocation5 + $0xf8] sm:$0xff] }
  0x1a   :  { %179 = vmatpush.msra.mxu2 %v106_v18  ;;  %202 = vmatpush.msra.mxu3 %v107_v19  ;;  %v96_v32 = vld [vmem:[#allocation5 + $0x100] sm:$0xff]  ;;  %v97_v33 = vld [vmem:[#allocation5 + $0x108] sm:$0xff]  ;;  %v90_v34 = vld [vmem:[#allocation5 + $0xd0] sm:$0xff] }
  0x1b   :  { %155 = vmatpush.msra.mxu1 %v109_v21  ;;  %133 = vmatpush.msra.mxu0 %v104_v24  ;;  %v91_v35 = vld [vmem:[#allocation5 + $0xd8] sm:$0xff]  ;;  %v92_v36 = vld [vmem:[#allocation5 + $0xe0] sm:$0xff]  ;;  %v93_v37 = vld [vmem:[#allocation5 + $0xe8] sm:$0xff] }
  0x1c   :  { %180 = vmatpush.msra.mxu2 %v102_v22  ;;  %203 = vmatpush.msra.mxu3 %v103_v23  ;;  %v86_v38 = vld [vmem:[#allocation5 + $0xb0] sm:$0xff]  ;;  %v87_v39 = vld [vmem:[#allocation5 + $0xb8] sm:$0xff]  ;;  %v88_v40 = vld [vmem:[#allocation5 + $0xc0] sm:$0xff] }
  0x1d   :  { %156 = vmatpush.msra.mxu1 %v105_v25  ;;  %134 = vmatpush.msra.mxu0 %v100_v28  ;;  %v89_v41 = vld [vmem:[#allocation5 + $0xc8] sm:$0xff]  ;;  %v82_v42 = vld [vmem:[#allocation5 + $0x90] sm:$0xff]  ;;  %v83_v43 = vld [vmem:[#allocation5 + $0x98] sm:$0xff] }
  0x1e   :  { %181 = vmatpush.msra.mxu2 %v98_v26  ;;  %204 = vmatpush.msra.mxu3 %v99_v27  ;;  %v84_v44 = vld [vmem:[#allocation5 + $0xa0] sm:$0xff]  ;;  %v85_v45 = vld [vmem:[#allocation5 + $0xa8] sm:$0xff]  ;;  %v78_v46 = vld [vmem:[#allocation5 + $0x70] sm:$0xff] }
  0x1f   :  { %157 = vmatpush.msra.mxu1 %v101_v29  ;;  %135 = vmatpush.msra.mxu0 %v96_v32  ;;  %v79_v47 = vld [vmem:[#allocation5 + $0x78] sm:$0xff]  ;;  %v80_v48 = vld [vmem:[#allocation5 + $0x80] sm:$0xff]  ;;  %v81_v49 = vld [vmem:[#allocation5 + $0x88] sm:$0xff] }
  0x20   :  { %182 = vmatpush.msra.mxu2 %v94_v30  ;;  %205 = vmatpush.msra.mxu3 %v95_v31  ;;  %v74_v50 = vld [vmem:[#allocation5 + $0x50] sm:$0xff]  ;;  %v75_v51 = vld [vmem:[#allocation5 + $0x58] sm:$0xff]  ;;  %v76_v52 = vld [vmem:[#allocation5 + $0x60] sm:$0xff] }
  0x21   :  { %158 = vmatpush.msra.mxu1 %v97_v33  ;;  %136 = vmatpush.msra.mxu0 %v92_v36  ;;  %v77_v53 = vld [vmem:[#allocation5 + $0x68] sm:$0xff]  ;;  %v70_v54 = vld [vmem:[#allocation5 + $0x30] sm:$0xff]  ;;  %v71_v55 = vld [vmem:[#allocation5 + $0x38] sm:$0xff] }
  0x22   :  { %183 = vmatpush.msra.mxu2 %v90_v34  ;;  %206 = vmatpush.msra.mxu3 %v91_v35  ;;  %v72_v56 = vld [vmem:[#allocation5 + $0x40] sm:$0xff]  ;;  %v73_v57 = vld [vmem:[#allocation5 + $0x48] sm:$0xff]  ;;  %v66_v58 = vld [vmem:[#allocation5 + $0x10] sm:$0xff] }
  0x23   :  { %159 = vmatpush.msra.mxu1 %v93_v37  ;;  %137 = vmatpush.msra.mxu0 %v88_v40  ;;  %v67_v59 = vld [vmem:[#allocation5 + $0x18] sm:$0xff]  ;;  %v62_v60 = vld [vmem:[#allocation2] sm:$0xff]  ;;  %v68_v61 = vld [vmem:[#allocation5 + $0x20] sm:$0xff] }
  0x24   :  { %184 = vmatpush.msra.mxu2 %v86_v38  ;;  %207 = vmatpush.msra.mxu3 %v87_v39  ;;  %v69_v62 = vld [vmem:[#allocation5 + $0x28] sm:$0xff]  ;;  %v275_v63 = vld [vmem:[#allocation7 + $0x178] sm:$0xff]  ;;  %v64_v1 = vld [vmem:[#allocation5] sm:$0xff] }
  0x25   :  { %160 = vmatpush.msra.mxu1 %v89_v41  ;;  %138 = vmatpush.msra.mxu0 %v84_v44  ;;  %v291_v0 = vld [vmem:[#allocation7 + $0x1f8] sm:$0xff]  ;;  %v65_v2 = vld [vmem:[#allocation5 + $0x8] sm:$0xff]  ;;  %v274_v3 = vld [vmem:[#allocation7 + $0x170] sm:$0xff] }
  0x26   :  { %185 = vmatpush.msra.mxu2 %v82_v42  ;;  %208 = vmatpush.msra.mxu3 %v83_v43  ;;  %v243_v4 = vld [vmem:[#allocation7 + $0x78] sm:$0xff]  ;;  %v290_v6 = vld [vmem:[#allocation7 + $0x1f0] sm:$0xff]  ;;  %v273_v7 = vld [vmem:[#allocation7 + $0x168] sm:$0xff] }
  0x27   :  { %161 = vmatpush.msra.mxu1 %v85_v45  ;;  %139 = vmatpush.msra.mxu0 %v80_v48  ;;  %v259_v5 = vld [vmem:[#allocation7 + $0xf8] sm:$0xff]  ;;  %v242_v8 = vld [vmem:[#allocation7 + $0x70] sm:$0xff]  ;;  %v272_v11 = vld [vmem:[#allocation7 + $0x160] sm:$0xff] }
  0x28   :  { %186 = vmatpush.msra.mxu2 %v78_v46  ;;  %209 = vmatpush.msra.mxu3 %v79_v47  ;;  %v63_v9 = vld [vmem:[#allocation2 + $0x8] sm:$0xff]  ;;  %v258_v10 = vld [vmem:[#allocation7 + $0xf0] sm:$0xff]  ;;  %v289_v12 = vld [vmem:[#allocation7 + $0x1e8] sm:$0xff] }
  0x29   :  { %162 = vmatpush.msra.mxu1 %v81_v49  ;;  %140 = vmatpush.msra.mxu0 %v76_v52  ;;  %v241_v13 = vld [vmem:[#allocation7 + $0x68] sm:$0xff]  ;;  %v271_v15 = vld [vmem:[#allocation7 + $0x158] sm:$0xff]  ;;  %v288_v16 = vld [vmem:[#allocation7 + $0x1e0] sm:$0xff] }
  0x2a   :  { %187 = vmatpush.msra.mxu2 %v74_v50  ;;  %210 = vmatpush.msra.mxu3 %v75_v51  ;;  %v257_v14 = vld [vmem:[#allocation7 + $0xe8] sm:$0xff]  ;;  %v240_v17 = vld [vmem:[#allocation7 + $0x60] sm:$0xff]  ;;  %v270_v19 = vld [vmem:[#allocation7 + $0x150] sm:$0xff] }
  0x2b   :  { %163 = vmatpush.msra.mxu1 %v77_v53  ;;  %141 = vmatpush.msra.mxu0 %v72_v56  ;;  %v256_v18 = vld [vmem:[#allocation7 + $0xe0] sm:$0xff]  ;;  %v287_v20 = vld [vmem:[#allocation7 + $0x1d8] sm:$0xff]  ;;  %v269_v23 = vld [vmem:[#allocation7 + $0x148] sm:$0xff] }
  0x2c   :  { %188 = vmatpush.msra.mxu2 %v70_v54  ;;  %211 = vmatpush.msra.mxu3 %v71_v55  ;;  %v239_v21 = vld [vmem:[#allocation7 + $0x58] sm:$0xff]  ;;  %v286_v24 = vld [vmem:[#allocation7 + $0x1d0] sm:$0xff]  ;;  %v268_v27 = vld [vmem:[#allocation7 + $0x140] sm:$0xff] }
  0x2d   :  { %164 = vmatpush.msra.mxu1 %v73_v57  ;;  %142 = vmatpush.msra.mxu0 %v68_v61  ;;  %v255_v22 = vld [vmem:[#allocation7 + $0xd8] sm:$0xff]  ;;  %v238_v25 = vld [vmem:[#allocation7 + $0x50] sm:$0xff]  ;;  %v285_v28 = vld [vmem:[#allocation7 + $0x1c8] sm:$0xff] }
  0x2e   :  { %189 = vmatpush.msra.mxu2 %v66_v58  ;;  %212 = vmatpush.msra.mxu3 %v67_v59  ;;  %v254_v26 = vld [vmem:[#allocation7 + $0xd0] sm:$0xff]  ;;  %v237_v29 = vld [vmem:[#allocation7 + $0x48] sm:$0xff]  ;;  %v267_v31 = vld [vmem:[#allocation7 + $0x138] sm:$0xff] }
  0x2f   :  { %190 = vmatmul.f32.vlgmr.msra.gmra.mxu2 %v62_v60  ;;  %213 = vmatmul.f32.vlgmr.msra.gmra.mxu3 %v62_v60  ;;  %v253_v30 = vld [vmem:[#allocation7 + $0xc8] sm:$0xff]  ;;  %v284_v32 = vld [vmem:[#allocation7 + $0x1c0] sm:$0xff]  ;;  %v266_v35 = vld [vmem:[#allocation7 + $0x130] sm:$0xff] }
  0x30   :  { %165 = vmatpush.msra.mxu1 %v69_v62  ;;  %338 = vmatpush.msrb.mxu2 %v275_v63  ;;  %v236_v33 = vld [vmem:[#allocation7 + $0x40] sm:$0xff]  ;;  %v283_v36 = vld [vmem:[#allocation7 + $0x1b8] sm:$0xff]  ;;  %v265_v39 = vld [vmem:[#allocation7 + $0x128] sm:$0xff] }
  0x31   :  { %361 = vmatpush.msrb.mxu3 %v291_v0  ;;  %143 = vmatpush.msra.mxu0 %v64_v1  ;;  %v252_v34 = vld [vmem:[#allocation7 + $0xc0] sm:$0xff]  ;;  %v235_v37 = vld [vmem:[#allocation7 + $0x38] sm:$0xff]  ;;  %v282_v40 = vld [vmem:[#allocation7 + $0x1b0] sm:$0xff] }
  0x32   :  { %166 = vmatpush.msra.mxu1 %v65_v2  ;;  %144 = vmatmul.f32.vlgmr.msra.gmra.mxu0 %v62_v60  ;;  %v251_v38 = vld [vmem:[#allocation7 + $0xb8] sm:$0xff]  ;;  %v234_v41 = vld [vmem:[#allocation7 + $0x30] sm:$0xff]  ;;  %v264_v43 = vld [vmem:[#allocation7 + $0x120] sm:$0xff] }
  0x33   :  { %167 = vmatmul.f32.vlgmr.msra.gmra.mxu1 %v62_v60  ;;  %339 = vmatpush.msrb.mxu2 %v274_v3  ;;  %v250_v42 = vld [vmem:[#allocation7 + $0xb0] sm:$0xff]  ;;  %v281_v44 = vld [vmem:[#allocation7 + $0x1a8] sm:$0xff]  ;;  %v263_v47 = vld [vmem:[#allocation7 + $0x118] sm:$0xff] }
  0x34   :  { %292 = vmatpush.msrb.mxu0 %v243_v4  ;;  %315 = vmatpush.msrb.mxu1 %v259_v5  ;;  %v233_v45 = vld [vmem:[#allocation7 + $0x28] sm:$0xff]  ;;  %v280_v48 = vld [vmem:[#allocation7 + $0x1a0] sm:$0xff]  ;;  %v262_v51 = vld [vmem:[#allocation7 + $0x110] sm:$0xff] }
  0x35   :  { %362 = vmatpush.msrb.mxu3 %v290_v6  ;;  %340 = vmatpush.msrb.mxu2 %v273_v7  ;;  %v249_v46 = vld [vmem:[#allocation7 + $0xa8] sm:$0xff]  ;;  %v232_v49 = vld [vmem:[#allocation7 + $0x20] sm:$0xff]  ;;  %v279_v52 = vld [vmem:[#allocation7 + $0x198] sm:$0xff] }
  0x36   :  { %293 = vmatpush.msrb.mxu0 %v242_v8  ;;  %316 = vmatpush.msrb.mxu1 %v258_v10  ;;  %v248_v50 = vld [vmem:[#allocation7 + $0xa0] sm:$0xff]  ;;  %v231_v53 = vld [vmem:[#allocation7 + $0x18] sm:$0xff]  ;;  %v261_v55 = vld [vmem:[#allocation7 + $0x108] sm:$0xff] }
  0x37   :  { %193 = vmatmul.f32.gmra.mxu2 %v63_v9  ;;  %216 = vmatmul.f32.gmra.mxu3 %v63_v9  ;;  %v247_v54 = vld [vmem:[#allocation7 + $0x98] sm:$0xff]  ;;  %v278_v56 = vld [vmem:[#allocation7 + $0x190] sm:$0xff]  ;;  %v260_v59 = vld [vmem:[#allocation7 + $0x100] sm:$0xff] }
  0x38   :  { %341 = vmatpush.msrb.mxu2 %v272_v11  ;;  %363 = vmatpush.msrb.mxu3 %v289_v12  ;;  %v230_v57 = vld [vmem:[#allocation7 + $0x10] sm:$0xff]  ;;  %v277_v60 = vld [vmem:[#allocation7 + $0x188] sm:$0xff]  ;;  %v276_v63 = vld [vmem:[#allocation7 + $0x180] sm:$0xff] }
  0x39   :  { %294 = vmatpush.msrb.mxu0 %v241_v13  ;;  %317 = vmatpush.msrb.mxu1 %v257_v14  ;;  %v246_v58 = vld [vmem:[#allocation7 + $0x90] sm:$0xff]  ;;  %v229_v61 = vld [vmem:[#allocation7 + $0x8] sm:$0xff]  ;;  %v228_v0 = vld [vmem:[#allocation7] sm:$0xff] }
  0x3a   :  { %342 = vmatpush.msrb.mxu2 %v271_v15  ;;  %147 = vmatmul.f32.gmra.mxu0 %v63_v9  ;;  %v245_v62 = vld [vmem:[#allocation7 + $0x88] sm:$0xff]  ;;  %v244_v1 = vld [vmem:[#allocation7 + $0x80] sm:$0xff] }
  0x3b   :  { %170 = vmatmul.f32.gmra.mxu1 %v63_v9  ;;  %364 = vmatpush.msrb.mxu3 %v288_v16 }
  0x3c   :  { %295 = vmatpush.msrb.mxu0 %v240_v17  ;;  %318 = vmatpush.msrb.mxu1 %v256_v18 }
  0x3d   :  { %343 = vmatpush.msrb.mxu2 %v270_v19  ;;  %365 = vmatpush.msrb.mxu3 %v287_v20 }
  0x3e   :  { %296 = vmatpush.msrb.mxu0 %v239_v21  ;;  %319 = vmatpush.msrb.mxu1 %v255_v22 }
  0x3f   :  { %344 = vmatpush.msrb.mxu2 %v269_v23  ;;  %366 = vmatpush.msrb.mxu3 %v286_v24 }
  0x40   :  { %297 = vmatpush.msrb.mxu0 %v238_v25  ;;  %320 = vmatpush.msrb.mxu1 %v254_v26 }
  0x41   :  { %345 = vmatpush.msrb.mxu2 %v268_v27  ;;  %367 = vmatpush.msrb.mxu3 %v285_v28 }
  0x42   :  { %298 = vmatpush.msrb.mxu0 %v237_v29  ;;  %321 = vmatpush.msrb.mxu1 %v253_v30 }
  0x43   :  { %346 = vmatpush.msrb.mxu2 %v267_v31  ;;  %368 = vmatpush.msrb.mxu3 %v284_v32 }
  0x44   :  { %299 = vmatpush.msrb.mxu0 %v236_v33  ;;  %322 = vmatpush.msrb.mxu1 %v252_v34 }
  0x45   :  { %347 = vmatpush.msrb.mxu2 %v266_v35  ;;  %369 = vmatpush.msrb.mxu3 %v283_v36 }
  0x46   :  { %300 = vmatpush.msrb.mxu0 %v235_v37  ;;  %323 = vmatpush.msrb.mxu1 %v251_v38 }
  0x47   :  { %348 = vmatpush.msrb.mxu2 %v265_v39  ;;  %370 = vmatpush.msrb.mxu3 %v282_v40 }
  0x48   :  { %301 = vmatpush.msrb.mxu0 %v234_v41  ;;  %324 = vmatpush.msrb.mxu1 %v250_v42 }
  0x49   :  { %349 = vmatpush.msrb.mxu2 %v264_v43  ;;  %371 = vmatpush.msrb.mxu3 %v281_v44 }
  0x4a   :  { %302 = vmatpush.msrb.mxu0 %v233_v45  ;;  %325 = vmatpush.msrb.mxu1 %v249_v46 }
  0x4b   :  { %350 = vmatpush.msrb.mxu2 %v263_v47  ;;  %372 = vmatpush.msrb.mxu3 %v280_v48 }
  0x4c   :  { %303 = vmatpush.msrb.mxu0 %v232_v49  ;;  %326 = vmatpush.msrb.mxu1 %v248_v50 }
  0x4d   :  { %351 = vmatpush.msrb.mxu2 %v262_v51  ;;  %373 = vmatpush.msrb.mxu3 %v279_v52 }
  0x4e   :  { %304 = vmatpush.msrb.mxu0 %v231_v53  ;;  %327 = vmatpush.msrb.mxu1 %v247_v54 }
  0x4f   :  { %352 = vmatpush.msrb.mxu2 %v261_v55  ;;  %374 = vmatpush.msrb.mxu3 %v278_v56 }
  0x50   :  { %305 = vmatpush.msrb.mxu0 %v230_v57  ;;  %328 = vmatpush.msrb.mxu1 %v246_v58 }
  0x51   :  { %353 = vmatpush.msrb.mxu2 %v260_v59  ;;  %375 = vmatpush.msrb.mxu3 %v277_v60 }
  0x52   :  { %306 = vmatpush.msrb.mxu0 %v229_v61  ;;  %329 = vmatpush.msrb.mxu1 %v245_v62 }
  0x53   :  { %376 = vmatpush.msrb.mxu3 %v276_v63 }
  0x54   :  { %307 = vmatpush.msrb.mxu0 %v228_v0  ;;  %330 = vmatpush.msrb.mxu1 %v244_v1 }
  0xaf   :  { %v145_v2 = vpop.f32.mrf.mxu0 }
  0xb0   :  { %v168_v3 = vpop.f32.mrf.mxu1  ;;  %v220_v4 = vmax.f32 %v145_v2, 0.0 }
  0xb1   :  { %v221_v5 = vmax.f32 %v168_v3, 0.0 }
  0xb2   :  { %v191_v6 = vpop.f32.mrf.mxu2  ;;  %v214_v7 = vpop.f32.mrf.mxu3  ;;  %308 = vmatmul.f32.vlgmr.msrb.gmra.mxu0 %v220_v4 }
  0xb3   :  { %v222_v8 = vmax.f32 %v191_v6, 0.0  ;;  %v223_v9 = vmax.f32 %v214_v7, 0.0  ;;  %331 = vmatmul.f32.vlgmr.msrb.gmra.mxu1 %v221_v5 }
  0xb5   :  { %354 = vmatmul.f32.vlgmr.msrb.gmra.mxu2 %v222_v8  ;;  %377 = vmatmul.f32.vlgmr.msrb.gmra.mxu3 %v223_v9 }
  0xb7   :  { %v148_v10 = vpop.f32.mrf.mxu0 }
  0xb8   :  { %v171_v11 = vpop.f32.mrf.mxu1  ;;  %v224_v12 = vmax.f32 %v148_v10, 0.0 }
  0xb9   :  { %v225_v13 = vmax.f32 %v171_v11, 0.0 }
  0xba   :  { %v194_v14 = vpop.f32.mrf.mxu2  ;;  %v217_v15 = vpop.f32.mrf.mxu3  ;;  %311 = vmatmul.f32.gmra.mxu0 %v224_v12 }
  0xbb   :  { %v226_v16 = vmax.f32 %v194_v14, 0.0  ;;  %v227_v17 = vmax.f32 %v217_v15, 0.0  ;;  %334 = vmatmul.f32.gmra.mxu1 %v225_v13 }
  0xbd   :  { %357 = vmatmul.f32.gmra.mxu2 %v226_v16  ;;  %380 = vmatmul.f32.gmra.mxu3 %v227_v17 }
 0x12f   :  { %v309_v18 = vpop.f32.mrf.mxu0 }
 0x130   :  { %v332_v19 = vpop.f32.mrf.mxu1 }
 0x131   :  { %v333_v20 = vadd.f32 %v332_v19, %v309_v18 }
 0x137   :  { %v312_v24 = vpop.f32.mrf.mxu0 }
 0x138   :  { %v355_v21 = vpop.f32.mrf.mxu2  ;;  %v378_v22 = vpop.f32.mrf.mxu3 }
 0x139   :  { %v356_v23 = vadd.f32 %v355_v21, %v333_v20  ;;  %v335_v25 = vpop.f32.mrf.mxu1 }
 0x13a   :  { %v336_v27 = vadd.f32 %v335_v25, %v312_v24 }
 0x13b   :  { %v379_v26 = vadd.f32 %v378_v22, %v356_v23 }
 0x13d   :  { %384 = vst [vmem:[#allocation8] sm:$0xff] %v379_v26 }
 0x140   :  { %v358_v28 = vpop.f32.mrf.mxu2  ;;  %v381_v29 = vpop.f32.mrf.mxu3 }
 0x141   :  { %v359_v30 = vadd.f32 %v358_v28, %v336_v27 }
 0x143   :  { %v382_v31 = vadd.f32 %v381_v29, %v359_v30 }
 0x145   :  { %385 = vst [vmem:[#allocation8 + $0x8] sm:$0xff] %v382_v31 }
 0x146   :  { %398 = dma.vmem_to_hbm [thread:$0]  %s391_s29, 256, %s393_s5, [#allocation4], %s520_s24, %s520_s24, %s521_s25  }
 0x147   :  { %514 = dma.done.wait [#allocation4], 256  }
 0x148   :  { %515 = vsyncadd [#allocation4], 4294967040 }
 0x149   :  { %403 = vsyncpa [#allocation3], 1 }
 0x14a   :  { %404 = vsyncpa [#allocation6], 1 }
 0x14b   :  { %405 = vsyncpa [#allocation4], 1 }

</bundles_post_ra>
